<compile_context>
chip_gen: v7x
topology: tpu7x:2x2x1
jax: 0.10.0
libtpu: 0.0.40
codegen_flags: <defaults>
</compile_context>

<pallas_src>
import functools

import jax
import jax.numpy as jnp
from jax.experimental import pallas as pl
from jax.experimental.pallas import tpu as pltpu

LANE = 128


def _round_up(n, m):
    return ((n + m - 1) // m) * m


def _pad2(a, rows, cols):
    r, c = a.shape
    if r == rows and c == cols:
        return a
    return jnp.pad(a, ((0, rows - r), (0, cols - c)))


# ----------------------------- Pallas kernel --------------------------------
def actor_mlp_kernel(x_ref, w1_ref, b1_ref, w2_ref, b2_ref, w3_ref, b3_ref,
                     o_ref, *, act_limit):
    # Layer 1: Linear([obs | eps]) + ReLU.  x_ref keeps its real feature width
    # (K < 128 is handled in-vreg by the MXU lowering; no HBM padding).
    h = jnp.dot(x_ref[...], w1_ref[...], preferred_element_type=jnp.float32)
    h = jnp.maximum(h + b1_ref[...], 0.0)

    # Layer 2: Linear + ReLU (activations cast back to the MXU compute dtype).
    h = jnp.dot(h.astype(w2_ref.dtype), w2_ref[...],
                preferred_element_type=jnp.float32)
    h = jnp.maximum(h + b2_ref[...], 0.0)

    # Output layer: Linear + Tanh, scaled by act_limit (f32 epilogue).
    h = jnp.dot(h.astype(w3_ref.dtype), w3_ref[...],
                preferred_element_type=jnp.float32)
    h = h + b3_ref[...]
    # NOTE: act_limit is a compile-time constant; a different act_limit value
    # retraces (fine for a fixed actor instance).
    o_ref[...] = (act_limit * jnp.tanh(h)).astype(o_ref.dtype)


# ------------------------- one-time parameter prep --------------------------
def prepare_actor_params(params, compute_dtype=jnp.bfloat16):
    """Pad + cast parameters ONCE (hoisted out of the per-step forward path).

    Hidden/output feature dims are padded to 128 lanes (they only live in
    VMEM-resident weight tiles / vregs); the layer-1 K dim keeps its real
    width so the streamed input needs no feature padding.
    Returns (padded_param_tuple, real_dims).
    """
    (w1, b1), (w2, b2), (w3, b3) = params
    in_dim, h1 = w1.shape
    h2, act_dim = w2.shape[1], w3.shape[1]
    h1p = _round_up(h1, LANE)
    h2p = _round_up(h2, LANE)
    actp = _round_up(act_dim, LANE)

    padded = (
        _pad2(w1, in_dim, h1p).astype(compute_dtype),
        _pad2(b1, 1, h1p).astype(jnp.float32),
        _pad2(w2, h1p, h2p).astype(compute_dtype),
        _pad2(b2, 1, h2p).astype(jnp.float32),
        _pad2(w3, h2p, actp).astype(compute_dtype),
        _pad2(b3, 1, actp).astype(jnp.float32),
    )
    dims = (in_dim, h1, h2, act_dim)
    return padded, dims


def _choose_batch_tiling(batch):
    """(tile_rows, padded_batch): batch-aware tiles."""
    batch = max(int(batch), 1)
    if batch <= 256:
        tb = _round_up(batch, 16)                # one small tile, minimal pad
        return tb, tb
    if batch <= 1024:
        tb = _round_up((batch + 1) // 2, 16)     # 2 tiles -> both v7x TCs busy
        return tb, 2 * tb
    tb = 512                                     # ~85% of HBM roofline, >=3 steps
    return tb, _round_up(batch, tb)


# ------------------------------ kernel wrapper -------------------------------
def run_actor_mlp(x, padded_params, dims, act_limit, out_dtype=jnp.bfloat16):
    """x: fused [B, obs_dim + epsilon_dim] layer-1 input (any float dtype)."""
    w1, b1, w2, b2, w3, b3 = padded_params
    in_dim, h1, h2, act_dim = dims
    assert x.shape[1] == in_dim
    actp = w3.shape[1]

    batch = x.shape[0]
    tb, b_p = _choose_batch_tiling(batch)

    # Cast to the MXU compute dtype; pad only batch rows (fuses with the
    # RNG / concat producer when the caller jits the whole forward).
    x = x.astype(w1.dtype)
    if b_p != batch:
        x = jnp.pad(x, ((0, b_p - batch), (0, 0)))

    grid = (b_p // tb,)
    resident = lambda a: pl.BlockSpec(a.shape, lambda i: (0, 0))

    # Real (unpadded) work for XLA's scheduler.
    wbytes = jnp.dtype(w1.dtype).itemsize
    flops = 2 * batch * (in_dim * h1 + h1 * h2 + h2 * act_dim)
    bytes_accessed = (
        batch * in_dim * wbytes
        + (in_dim * h1 + h1 * h2 + h2 * act_dim) * wbytes
        + (h1 + h2 + act_dim) * 4
        + batch * act_dim * jnp.dtype(out_dtype).itemsize)

    kernel = functools.partial(actor_mlp_kernel, act_limit=float(act_limit))
    out = pl.pallas_call(
        kernel,
        out_shape=jax.ShapeDtypeStruct((b_p, actp), out_dtype),
        grid=grid,
        in_specs=[
            # Streamed batch tile; feature dim stays at its real width
            # (block last dim == full array dim).
            pl.BlockSpec((tb, in_dim), lambda i: (i, 0)),
            # Weights / biases stay resident in VMEM (constant index_maps).
            resident(w1), resident(b1),
            resident(w2), resident(b2),
            resident(w3), resident(b3),
        ],
        out_specs=pl.BlockSpec((tb, actp), lambda i: (i, 0)),
        compiler_params=pltpu.CompilerParams(
            dimension_semantics=("parallel",),
            vmem_limit_bytes=32 << 20,
        ),
        cost_estimate=pl.CostEstimate(
            flops=flops,
            transcendentals=batch * act_dim,
            bytes_accessed=bytes_accessed),
    )(x, w1, b1, w2, b2, w3, b3)

    # Strip batch / lane padding.
    return out[:batch, :act_dim]


def actor_forward(key, obs, padded_params, dims, act_limit,
                  std=1.0, noise='gaussian', epsilon_limit=5.0):
    in_dim = dims[0]
    act_dim = dims[3]
    batch = obs.shape[0]
    epsilon_dim = in_dim - obs.shape[1]
    if noise == 'gaussian':
        eps = std * jax.random.normal(key, (batch, epsilon_dim),
                                      dtype=jnp.float32)
        eps = jnp.clip(eps, -epsilon_limit, epsilon_limit)
    else:
        eps = jax.random.uniform(key, (batch, epsilon_dim),
                                 dtype=jnp.float32) * 2.0 - 1.0
    # torch.cat([obs, epsilon]) folded into one fused layer-1 input; under jit
    # the RNG + concat + cast + batch-pad fuse into the kernel input producer.
    # TODO(synk): optionally generate eps in-kernel with pltpu.prng_* to drop
    # this HBM stream entirely (changes the RNG draw vs. the JAX reference).
    x = jnp.concatenate([obs, eps], axis=-1)
    out = run_actor_mlp(x, padded_params, dims, act_limit)
    assert out.shape == (batch, act_dim)
    return out.astype(jnp.float32)


# ------------------------------ parameter init ------------------------------
def xavier_normal_init(key, fan_in, fan_out, gain=0.01):
    # Matches torch.nn.init.xavier_normal_(weight, gain=0.01) for a Linear
    # layer (xavier std is symmetric in fan_in/fan_out, so storing the weight
    # transposed as (in, out) is exact).
    std = gain * jnp.sqrt(2.0 / (fan_in + fan_out))
    return std * jax.random.normal(key, (fan_in, fan_out), dtype=jnp.float32)


def make_actor_params(key, obs_dim, act_dim, hidden_sizes):
    epsilon_dim = act_dim * act_dim
    hidden_sizes = list(hidden_sizes)
    hidden_sizes[0] += epsilon_dim                      # mirrors __init__
    sizes = [obs_dim + epsilon_dim] + hidden_sizes + [act_dim]
    params = []
    keys = jax.random.split(key, len(sizes) - 1)
    for j in range(len(sizes) - 1):
        w = xavier_normal_init(keys[j], sizes[j], sizes[j + 1])
        b = jnp.zeros((1, sizes[j + 1]), dtype=jnp.float32)  # bias zeroed
        params.append((w, b))
    return params, epsilon_dim


# ---------------------------- pure-JAX reference -----------------------------
def actor_reference(obs, eps, params, act_limit):
    x = jnp.concatenate([obs, eps], axis=-1)
    (w1, b1), (w2, b2), (w3, b3) = params
    h = jnp.maximum(x @ w1 + b1, 0.0)
    h = jnp.maximum(h @ w2 + b2, 0.0)
    return act_limit * jnp.tanh(h @ w3 + b3)


# ---------------------------------- main -------------------------------------
if __name__ == "__main__":
    obs_dim = 16
    act_dim = 4          # epsilon_dim = act_dim**2 = 16
    hidden_sizes = [32, 32]
    act_limit = 2.0
    batch = 8

    root = jax.random.PRNGKey(0)
    k_params, k_obs, k_eps = jax.random.split(root, 3)

    params, epsilon_dim = make_actor_params(k_params, obs_dim, act_dim,
                                            hidden_sizes)
    obs = jax.random.normal(k_obs, (batch, obs_dim), dtype=jnp.float32)

    # One-time padded / bf16 parameter prep (hoisted out of the step path).
    padded_params, dims = prepare_actor_params(params)

    # Whole forward (RNG + concat + cast + Pallas kernel) under a single jit.
    fwd = jax.jit(lambda key, o: actor_forward(key, o, padded_params, dims,
                                               act_limit))
    pi_action = jax.block_until_ready(fwd(k_eps, obs))

    # Reference (same epsilon draw as actor_forward's gaussian branch).
    eps_ref = jnp.clip(1.0 * jax.random.normal(k_eps, (batch, epsilon_dim),
                                               dtype=jnp.float32), -5.0, 5.0)
    ref = actor_reference(obs, eps_ref, params, act_limit)

    assert pi_action.shape == (batch, act_dim)
    assert bool(jnp.all(jnp.abs(pi_action) <= act_limit + 1e-5))
    max_err = float(jnp.max(jnp.abs(pi_action - ref)))
    scale = float(jnp.max(jnp.abs(ref))) + 1e-12
    assert max_err <= 0.05 * scale + 1e-6, (max_err, scale)
    print("KERNEL_OK")
</pallas_src>

<mosaic_0001>
module attributes {stable_mosaic.version = 11 : i64} {
  func.func @actor_mlp_kernel(%arg0: i32, %arg1: memref<16x32xbf16, #tpu.memory_space<vmem>>, %arg2: memref<32x128xbf16, #tpu.memory_space<vmem>>, %arg3: memref<1x128xf32, #tpu.memory_space<vmem>>, %arg4: memref<128x128xbf16, #tpu.memory_space<vmem>>, %arg5: memref<1x128xf32, #tpu.memory_space<vmem>>, %arg6: memref<128x128xbf16, #tpu.memory_space<vmem>>, %arg7: memref<1x128xf32, #tpu.memory_space<vmem>>, %arg8: memref<16x128xbf16, #tpu.memory_space<vmem>>) attributes {dimension_semantics = [#tpu.dimension_semantics<parallel>], iteration_bounds = array<i64: 1>, scalar_prefetch = 0 : i64, scratch_operands = 0 : i64, tpu.core_type = #tpu.core_type<tc>, window_params = [{transform_indices = @transform_0, window_bounds = array<i64: 16, 32>}, {pipeline_mode = #tpu.pipeline_mode<synchronous>, transform_indices = @transform_1, window_bounds = array<i64: 32, 128>}, {pipeline_mode = #tpu.pipeline_mode<synchronous>, transform_indices = @transform_2, window_bounds = array<i64: 1, 128>}, {pipeline_mode = #tpu.pipeline_mode<synchronous>, transform_indices = @transform_3, window_bounds = array<i64: 128, 128>}, {pipeline_mode = #tpu.pipeline_mode<synchronous>, transform_indices = @transform_4, window_bounds = array<i64: 1, 128>}, {pipeline_mode = #tpu.pipeline_mode<synchronous>, transform_indices = @transform_5, window_bounds = array<i64: 128, 128>}, {pipeline_mode = #tpu.pipeline_mode<synchronous>, transform_indices = @transform_6, window_bounds = array<i64: 1, 128>}, {transform_indices = @transform_7, window_bounds = array<i64: 16, 128>}]} {
    %c0 = arith.constant 0 : index
    %c0_0 = arith.constant 0 : index
    %0 = vector.load %arg1[%c0, %c0_0] : memref<16x32xbf16, #tpu.memory_space<vmem>>, vector<16x32xbf16>
    %c0_1 = arith.constant 0 : index
    %c0_2 = arith.constant 0 : index
    %1 = vector.load %arg2[%c0_1, %c0_2] : memref<32x128xbf16, #tpu.memory_space<vmem>>, vector<32x128xbf16>
    %cst = arith.constant dense<0.000000e+00> : vector<16x128xf32>
    %2 = tpu.matmul %0, %1, %cst {dimension_numbers = #tpu.dot_dimension_numbers<[1], [0], [0], [1], [0, 0, 1, 1], [], []>} : vector<16x32xbf16>, vector<32x128xbf16>, vector<16x128xf32> -> vector<16x128xf32>
    %c0_3 = arith.constant 0 : index
    %c0_4 = arith.constant 0 : index
    %3 = vector.load %arg3[%c0_3, %c0_4] : memref<1x128xf32, #tpu.memory_space<vmem>>, vector<1x128xf32>
    %4 = vector.broadcast %3 : vector<1x128xf32> to vector<16x128xf32>
    %5 = arith.addf %2, %4 : vector<16x128xf32>
    %cst_5 = arith.constant 0.000000e+00 : f32
    %6 = vector.broadcast %cst_5 : f32 to vector<16x128xf32>
    %7 = arith.maximumf %5, %6 : vector<16x128xf32>
    %8 = arith.truncf %7 : vector<16x128xf32> to vector<16x128xbf16>
    %c0_6 = arith.constant 0 : index
    %c0_7 = arith.constant 0 : index
    %9 = vector.load %arg4[%c0_6, %c0_7] : memref<128x128xbf16, #tpu.memory_space<vmem>>, vector<128x128xbf16>
    %cst_8 = arith.constant dense<0.000000e+00> : vector<16x128xf32>
    %10 = tpu.matmul %8, %9, %cst_8 {dimension_numbers = #tpu.dot_dimension_numbers<[1], [0], [0], [1], [0, 0, 1, 1], [], []>} : vector<16x128xbf16>, vector<128x128xbf16>, vector<16x128xf32> -> vector<16x128xf32>
    %c0_9 = arith.constant 0 : index
    %c0_10 = arith.constant 0 : index
    %11 = vector.load %arg5[%c0_9, %c0_10] : memref<1x128xf32, #tpu.memory_space<vmem>>, vector<1x128xf32>
    %12 = vector.broadcast %11 : vector<1x128xf32> to vector<16x128xf32>
    %13 = arith.addf %10, %12 : vector<16x128xf32>
    %cst_11 = arith.constant 0.000000e+00 : f32
    %14 = vector.broadcast %cst_11 : f32 to vector<16x128xf32>
    %15 = arith.maximumf %13, %14 : vector<16x128xf32>
    %16 = arith.truncf %15 : vector<16x128xf32> to vector<16x128xbf16>
    %c0_12 = arith.constant 0 : index
    %c0_13 = arith.constant 0 : index
    %17 = vector.load %arg6[%c0_12, %c0_13] : memref<128x128xbf16, #tpu.memory_space<vmem>>, vector<128x128xbf16>
    %cst_14 = arith.constant dense<0.000000e+00> : vector<16x128xf32>
    %18 = tpu.matmul %16, %17, %cst_14 {dimension_numbers = #tpu.dot_dimension_numbers<[1], [0], [0], [1], [0, 0, 1, 1], [], []>} : vector<16x128xbf16>, vector<128x128xbf16>, vector<16x128xf32> -> vector<16x128xf32>
    %c0_15 = arith.constant 0 : index
    %c0_16 = arith.constant 0 : index
    %19 = vector.load %arg7[%c0_15, %c0_16] : memref<1x128xf32, #tpu.memory_space<vmem>>, vector<1x128xf32>
    %20 = vector.broadcast %19 : vector<1x128xf32> to vector<16x128xf32>
    %21 = arith.addf %18, %20 : vector<16x128xf32>
    %22 = math.tanh %21 : vector<16x128xf32>
    %cst_17 = arith.constant 2.000000e+00 : f32
    %23 = vector.broadcast %cst_17 : f32 to vector<16x128xf32>
    %24 = arith.mulf %23, %22 : vector<16x128xf32>
    %25 = arith.truncf %24 : vector<16x128xf32> to vector<16x128xbf16>
    %c0_18 = arith.constant 0 : index
    %c0_19 = arith.constant 0 : index
    %26 = vector.load %arg8[%c0_18, %c0_19] : memref<16x128xbf16, #tpu.memory_space<vmem>>, vector<16x128xbf16>
    tpu.vector_store %arg8[%c0_18, %c0_19], %25 {strides = array<i32>} : memref<16x128xbf16, #tpu.memory_space<vmem>>, vector<16x128xbf16>,
    return
  }
  func.func @transform_0(%arg0: i32) -> (i32, i32) {
    %c0_i32 = arith.constant 0 : i32
    %c0_i32_0 = arith.constant 0 : i32
    return %arg0, %c0_i32 : i32, i32
  }
  func.func @transform_1(%arg0: i32) -> (i32, i32) {
    %c0_i32 = arith.constant 0 : i32
    %c0_i32_0 = arith.constant 0 : i32
    %c0_i32_1 = arith.constant 0 : i32
    return %c0_i32, %c0_i32_0 : i32, i32
  }
  func.func @transform_2(%arg0: i32) -> (i32, i32) {
    %c0_i32 = arith.constant 0 : i32
    %c0_i32_0 = arith.constant 0 : i32
    %c0_i32_1 = arith.constant 0 : i32
    return %c0_i32, %c0_i32_0 : i32, i32
  }
  func.func @transform_3(%arg0: i32) -> (i32, i32) {
    %c0_i32 = arith.constant 0 : i32
    %c0_i32_0 = arith.constant 0 : i32
    %c0_i32_1 = arith.constant 0 : i32
    return %c0_i32, %c0_i32_0 : i32, i32
  }
  func.func @transform_4(%arg0: i32) -> (i32, i32) {
    %c0_i32 = arith.constant 0 : i32
    %c0_i32_0 = arith.constant 0 : i32
    %c0_i32_1 = arith.constant 0 : i32
    return %c0_i32, %c0_i32_0 : i32, i32
  }
  func.func @transform_5(%arg0: i32) -> (i32, i32) {
    %c0_i32 = arith.constant 0 : i32
    %c0_i32_0 = arith.constant 0 : i32
    %c0_i32_1 = arith.constant 0 : i32
    return %c0_i32, %c0_i32_0 : i32, i32
  }
  func.func @transform_6(%arg0: i32) -> (i32, i32) {
    %c0_i32 = arith.constant 0 : i32
    %c0_i32_0 = arith.constant 0 : i32
    %c0_i32_1 = arith.constant 0 : i32
    return %c0_i32, %c0_i32_0 : i32, i32
  }
  func.func @transform_7(%arg0: i32) -> (i32, i32) {
    %c0_i32 = arith.constant 0 : i32
    %c0_i32_0 = arith.constant 0 : i32
    return %arg0, %c0_i32 : i32, i32
  }
}

</mosaic_0001>

<bundles_post_ra>
// kernel: _lambda_.1
= control target key start
LH: loop header
LB: loop body
LE: loop exit
PB: predicated region body
PF: predicated region fallthrough
CT: control target
= control target key end

     0   :  { %12 = vsyncpa [#allocation3], 0  ;;  %s518_s24 = smov [#allocation2]   ;;  %s644_s0 = inlined_call_operand.vmem [shape: bf16[16,32], index: 0, kind: input, shape index: {}]   ;;  %s645_s1 = inlined_call_operand.vmem [shape: bf16[32,128], index: 1, kind: input, shape index: {}]   ;;  %s646_s2 = inlined_call_operand.vmem [shape: f32[1,128], index: 2, kind: input, shape index: {}, may-alias: {2,4,6}]   ;;  %s647_s3 = inlined_call_operand.hbm [shape: bf16[128,128], index: 3, kind: input, shape index: {}]   ;;  %s648_s4 = inlined_call_operand.vmem [shape: f32[1,128], index: 4, kind: input, shape index: {}, may-alias: {2,4,6}]   ;;  %s649_s5 = inlined_call_operand.vmem [shape: bf16[128,128], index: 5, kind: input, shape index: {}]   ;;  %s650_s6 = inlined_call_operand.vmem [shape: f32[1,128], index: 6, kind: input, shape index: {}, may-alias: {2,4,6}]   ;;  %s651_s7 = inlined_call_operand.vmem [shape: bf16[16,128], index: 7, kind: output, shape index: {}]  }
   0x1   :  { %s24_s25 = sshll.u32 %s518_s24, 4  ;;  %s494_s28 = scalar_lea.hbm %s647_s3, 1024  ;;  %s25_s25 = int_to_ptr.vmem [resolvable:$true] %s24_s25 }
   0x2   :  { %p495_p0 = scmp.ne.s32.totalorder %s647_s3, %s494_s28  ;;  %p498_p1 = scmp.lt.u32.totalorder %s494_s28, %s647_s3 }
   0x4   :  { %p500_p2 = pnand %p498_p1, %p495_p0 }
   0x6   :  { %503 = shalt.err (!%p500_p2)
}
   0x7   :  { %s504_s10 = scalar_lea.vmem %s25_s25, 1024  ;;  %p509_p4 = scmp.lt.s32.totalorder %s25_s25, %s25_s25 }
   0x8   :  { %p505_p3 = scmp.ne.s32.totalorder %s25_s25, %s504_s10  ;;  %p510_p5 = scmp.lt.s32.totalorder %s504_s10, %s504_s10 }
   0xa   :  { %p511_p6 = por %p510_p5, %p509_p4 }
   0xc   :  { %p512_p7 = pnand %p511_p6, %p505_p3 }
   0xe   :  { %515 = shalt.err (!%p512_p7)
}
   0xf   :  { %s519_s11 = smov 64   ;;  %s520_s12 = smov 4  }
  0x10   :  { %30 = dma.hbm_to_vmem [thread:$0]  %s647_s3, 1024, %s25_s25, [#allocation3], %s519_s11, %s519_s11, %s520_s12  }
  0x11   :  { %516 = dma.done.wait [#allocation3], 1024  }
  0x12   :  { %517 = vsyncadd [#allocation3], 4294966272  ;;  %v521_v0 = vmov 0.0   ;;  %vm522_vm0 = vmmov 0   ;;  %v471_v1 = vld [vmem:[%s645_s1] sm:$0xff]   ;;  %v472_v2 = vld [vmem:[%s645_s1 + $0x8] sm:$0xff]  }
  0x13   :  { %418 = vmatprep.subr.bf16.mxu0 %v521_v0  ;;  %422 = vmatprep.mubr.msk.bf16.mxu0 %vm522_vm0, %v521_v0  ;;  %v474_v3 = vld [vmem:[#allocation2] sm:$0xff]   ;;  %v475_v5 = vld [vmem:[#allocation2 + $0x8] sm:$0xff]   ;;  %vm71_vm1 = vcmask 261120   ;;  %v476_v6 = vld [vmem:[#allocation2 + $0x10] sm:$0xff]  }
  0x14   :  { %426 = vmatprep.subr.bf16.mxu1 %v521_v0  ;;  %442 = vmatprep.mubr.msk.bf16.mxu1 %vm522_vm0, %v521_v0  ;;  %v473_v4 = vld [vmem:[%s644_s0] sm:$0xff]   ;;  %v477_v7 = vld [vmem:[#allocation2 + $0x18] sm:$0xff]   ;;  %v479_v9 = vld [vmem:[#allocation2 + $0x28] sm:$0xff]  }
  0x15   :  { %419 = vmatpush3.bf16.msra.mxu0 %v471_v1  ;;  %427 = vmatpush3.bf16.msra.mxu1 %v474_v3  ;;  %v478_v8 = vld [vmem:[#allocation2 + $0x20] sm:$0xff]   ;;  %v480_v10 = vld [vmem:[#allocation2 + $0x30] sm:$0xff]   ;;  %v481_v11 = vld [vmem:[#allocation2 + $0x38] sm:$0xff]  }
  0x16   :  { %420 = vmatprep.subr.bf16.mxu0 %v521_v0  ;;  %428 = vmatprep.subr.bf16.mxu1 %v521_v0  ;;  %v482_v12 = vld [vmem:[%s649_s5] sm:$0xff]   ;;  %v483_v13 = vld [vmem:[%s649_s5 + $0x8] sm:$0xff]   ;;  %v484_v14 = vld [vmem:[%s649_s5 + $0x10] sm:$0xff]  }
  0x17   :  { %v485_v15 = vld [vmem:[%s649_s5 + $0x18] sm:$0xff]   ;;  %v486_v16 = vld [vmem:[%s649_s5 + $0x20] sm:$0xff]   ;;  %v487_v17 = vld [vmem:[%s649_s5 + $0x28] sm:$0xff]  }
  0x18   :  { %v365_v18 = vld [vmem:[%s646_s2] ss:$0 sm:$0xff]  ;;  %v488_v28 = vld [vmem:[%s649_s5 + $0x30] sm:$0xff]   ;;  %v489_v29 = vld [vmem:[%s649_s5 + $0x38] sm:$0xff]  }
  0x19   :  { %421 = vmatpush3.bf16.msra.mxu0 %v472_v2  ;;  %429 = vmatpush3.bf16.msra.mxu1 %v475_v5  ;;  %v370_v30 = vld [vmem:[%s648_s4] ss:$0 sm:$0xff] }
  0x1a   :  { %446 = vmatprep.subr.bf16.mxu0 %v521_v0  ;;  %430 = vmatprep.subr.bf16.mxu1 %v521_v0  ;;  %v379_v40 = vld [vmem:[%s650_s6] ss:$0 sm:$0xff] }
  0x1c   :  { %423 = vmatmul.mubr.msk.bf16.vlgmr.msra.gmra.mrb[0].mxu0 %vm71_vm1, %v473_v4 }
  0x1d   :  { %462 = vmatprep.mubr.msk.bf16.mxu0 %vm522_vm0, %v521_v0  ;;  %431 = vmatpush3.bf16.msra.mxu1 %v476_v6 }
  0x1e   :  { %432 = vmatprep.subr.bf16.mxu1 %v521_v0  ;;  %447 = vmatpush3.bf16.msra.mxu0 %v482_v12 }
  0x1f   :  { %448 = vmatprep.subr.bf16.mxu0 %v521_v0 }
  0x21   :  { %433 = vmatpush3.bf16.msra.mxu1 %v477_v7 }
  0x22   :  { %434 = vmatprep.subr.bf16.mxu1 %v521_v0  ;;  %449 = vmatpush3.bf16.msra.mxu0 %v483_v13 }
  0x23   :  { %450 = vmatprep.subr.bf16.mxu0 %v521_v0 }
  0x25   :  { %435 = vmatpush3.bf16.msra.mxu1 %v478_v8 }
  0x26   :  { %436 = vmatprep.subr.bf16.mxu1 %v521_v0  ;;  %451 = vmatpush3.bf16.msra.mxu0 %v484_v14 }
  0x27   :  { %452 = vmatprep.subr.bf16.mxu0 %v521_v0 }
  0x29   :  { %437 = vmatpush3.bf16.msra.mxu1 %v479_v9 }
  0x2a   :  { %438 = vmatprep.subr.bf16.mxu1 %v521_v0  ;;  %453 = vmatpush3.bf16.msra.mxu0 %v485_v15 }
  0x2b   :  { %454 = vmatprep.subr.bf16.mxu0 %v521_v0 }
  0x2d   :  { %439 = vmatpush3.bf16.msra.mxu1 %v480_v10 }
  0x2e   :  { %440 = vmatprep.subr.bf16.mxu1 %v521_v0  ;;  %455 = vmatpush3.bf16.msra.mxu0 %v486_v16 }
  0x2f   :  { %456 = vmatprep.subr.bf16.mxu0 %v521_v0 }
  0x31   :  { %441 = vmatpush3.bf16.msra.mxu1 %v481_v11 }
  0x32   :  { %457 = vmatpush3.bf16.msra.mxu0 %v487_v17 }
  0x33   :  { %458 = vmatprep.subr.bf16.mxu0 %v521_v0 }
  0x36   :  { %459 = vmatpush3.bf16.msra.mxu0 %v488_v28 }
  0x37   :  { %460 = vmatprep.subr.bf16.mxu0 %v521_v0 }
  0x3a   :  { %461 = vmatpush3.bf16.msra.mxu0 %v489_v29 }
  0xef   :  { %v109_v19 = vpop.f32.mrb[0].mxu0 }
  0xf0   :  { %v110_v20 = vadd.f32 %v365_v18, %v109_v19  ;;  %v424_v21 = vpop.f32.mrb[1].mxu0 }
  0xf1   :  { %v112_v22 = vpop.f32.mrb[2].mxu0 }
  0xf2   :  { %v113_v23 = vadd.f32 %v365_v18, %v112_v22  ;;  %v425_v24 = vpop.f32.mrb[3].mxu0  ;;  %v116_v25 = vmax.f32 %v110_v20, 0.0 }
  0xf4   :  { %v117_v26 = vmax.f32 %v113_v23, 0.0 }
  0xf6   :  { %v118_v27 = vpack.c.bf16 %v117_v26, %v116_v25 }
  0xf8   :  { %443 = vmatmul.mubr.bf16.vlgmr.msra.gmra.mrb[0].mxu1 %v118_v27 }
 0x1cb   :  { %v224_v31 = vpop.f32.mrb[0].mxu1 }
 0x1cc   :  { %v225_v32 = vadd.f32 %v370_v30, %v224_v31  ;;  %v444_v33 = vpop.f32.mrb[1].mxu1 }
 0x1cd   :  { %v227_v34 = vpop.f32.mrb[2].mxu1 }
 0x1ce   :  { %v228_v35 = vadd.f32 %v370_v30, %v227_v34  ;;  %v445_v36 = vpop.f32.mrb[3].mxu1  ;;  %v231_v37 = vmax.f32 %v225_v32, 0.0 }
 0x1d0   :  { %v232_v38 = vmax.f32 %v228_v35, 0.0 }
 0x1d2   :  { %v233_v39 = vpack.c.bf16 %v232_v38, %v231_v37 }
 0x1d4   :  { %463 = vmatmul.mubr.bf16.vlgmr.msra.gmra.mrb[4].mxu0 %v233_v39 }
 0x2a7   :  { %v339_v41 = vpop.f32.mrb[4].mxu0 }
 0x2a8   :  { %v340_v42 = vadd.f32 %v379_v40, %v339_v41  ;;  %v464_v43 = vpop.f32.mrb[5].mxu0 }
 0x2a9   :  { %v342_v44 = vpop.f32.mrb[6].mxu0 }
 0x2aa   :  { %490 = vtanh.f32 %v340_v42  ;;  %v343_v45 = vadd.f32 %v379_v40, %v342_v44  ;;  %v465_v46 = vpop.f32.mrb[7].mxu0 }
 0x2ac   :  { %492 = vtanh.f32 %v343_v45 }
 0x2b4   :  { %v491_v47 = vpop.eup %490 }
 0x2b5   :  { %v348_v49 = vmul.f32 2.0, %v491_v47 }
 0x2b6   :  { %v493_v48 = vpop.eup %492 }
 0x2b7   :  { %v349_v50 = vmul.f32 2.0, %v493_v48 }
 0x2b9   :  { %v395_v51 = vpack.c.bf16 %v349_v50, %v348_v49 }
 0x2bb   :  { %396 = vst [vmem:[%s651_s7] sm:$0xff] %v395_v51  }
 0x2bc   :  { %364 = vsyncpa [#allocation3], 1 }

</bundles_post_ra>
